<compile_context>
chip_gen: v7x
topology: tpu7x:2x2x1
jax: 0.10.0
libtpu: 0.0.40
codegen_flags: <defaults>
</compile_context>

<pallas_src>
import jax
import jax.numpy as jnp
from jax.experimental import pallas as pl
from jax.experimental.pallas import tpu as pltpu


# --------------------------------------------------------------------------- #
# Kernel
# --------------------------------------------------------------------------- #
def _gate_pool_kernel(gate_ref, x_ref, o_ref, acc_ref):
    # gate_ref: (tn, C) f32   x_ref: (tb, tn, C)   o_ref: (tb, C)   acc_ref: (tb, C) f32
    k = pl.program_id(1)

    @pl.when(k == 0)
    def _init():
        acc_ref[...] = jnp.zeros_like(acc_ref)

    x = x_ref[...].astype(jnp.float32)          # (tb, tn, C)
    g = gate_ref[...]                           # (tn, C) f32, broadcast over tb
    acc_ref[...] += jnp.sum(x * g, axis=1)      # VPU multiply + XLU sublane reduce

    @pl.when(k == pl.num_programs(1) - 1)
    def _finish():
        o_ref[...] = acc_ref[...].astype(o_ref.dtype)


# --------------------------------------------------------------------------- #
# Tile / VMEM sizing
# --------------------------------------------------------------------------- #
def _round_up(a: int, b: int) -> int:
    return ((a + b - 1) // b) * b


def _vmem_capacity_bytes() -> int:
    try:
        return int(pltpu.get_tpu_info().vmem_capacity_bytes)
    except Exception:
        return 64 * 1024 * 1024  # conservative: v7x per-TensorCore VMEM


def _pick_tiles(M, N, C, x_dtype, out_dtype):
    """Choose (tb, tn, vmem_limit_bytes) for the (M, N, C) -> (M, C) reduction."""
    itemsize = jnp.dtype(x_dtype).itemsize
    out_itemsize = jnp.dtype(out_dtype).itemsize
    c_pad = _round_up(C, 128)                    # lane padding of the last dim
    sub = max(8, 32 // itemsize)                 # sublane tile: 8 f32 / 16 bf16 / 32 int8
    sub_out = max(8, 32 // out_itemsize)

    capacity = _vmem_capacity_bytes()
    budget = (capacity * 3) // 8                 # ~24 MiB on v7x, ~48 MiB on v5e/v6e

    def footprint(tb, tn):
        tnp = _round_up(tn, sub)
        tbp = _round_up(tb, sub_out)
        x_blk = tb * tnp * c_pad * itemsize              # one padded x buffer
        gate_blk = _round_up(tn, 8) * c_pad * 4          # one padded gate buffer (f32)
        out_blk = tbp * c_pad * out_itemsize             # one padded out buffer
        acc_blk = _round_up(tb, 8) * c_pad * 4           # f32 accumulator scratch
        f32_tmp = tb * tnp * c_pad * 4                   # in-kernel x*g f32 product
        return 2 * x_blk + 2 * gate_blk + 2 * out_blk + acc_blk + f32_tmp

    min_tb = M if M < 8 else 8

    # --- node (reduction) tile: full N if it fits, else the largest exact divisor ---
    tn = N
    if footprint(min_tb, N) > budget:
        best = None
        d = sub
        while d < N:
            if N % d == 0:
                if footprint(min_tb, d) <= budget:
                    best = d                      # footprint is monotone in d -> keep largest
                elif best is None:
                    best = d                      # smallest divisor as last resort
            d += sub
        if best is not None:
            tn = best
        # TODO(synk): also tile C for pathologically wide rows (huge C).

    # --- batch tile: as large as the budget allows, >= 2 blocks when M >= 16 ---
    if M < 8:
        tb = M
    else:
        tb_cap = M
        if M >= 16:
            tb_cap = _round_up(pl.cdiv(M, 2), 8)  # keep >= 2 parallel blocks (v7x megacore)
            if tb_cap >= M:
                tb_cap = max(8, ((M // 2) // 8) * 8)
        tnp = _round_up(tn, sub)
        per_row = (2 * tnp * c_pad * itemsize     # double-buffered x rows
                   + 2 * c_pad * out_itemsize     # double-buffered out rows
                   + c_pad * 4                    # accumulator rows
                   + tnp * c_pad * 4)             # f32 product temporary
        fixed = 2 * _round_up(tn, 8) * c_pad * 4  # gate buffers
        tb_fit = max(1, (budget - fixed) // per_row)
        tb = min(tb_cap, tb_fit)
        if tb >= M:
            tb = M                                # whole batch in one (full-dim) block
        else:
            tb = max(8, (tb // 8) * 8)            # sublane-dense output blocks

    fp = footprint(tb, tn)
    vmem_limit = max(fp + (4 << 20), 16 << 20)    # derived from the actual footprint
    vmem_limit = min(vmem_limit, (capacity * 9) // 10)
    vmem_limit = max(vmem_limit, fp)
    return tb, tn, int(vmem_limit)


# --------------------------------------------------------------------------- #
# Wrapper
# --------------------------------------------------------------------------- #
def gate_graph_pooling(gate, x):
    """gate: (N,), x: (..., N, C) with 1 or 2 leading batch dims.

    Returns einsum('...nc,n->...c', x, gate), matching GateGraphPooling.forward.
    """
    N = gate.shape[0]
    *lead, Nx, C = x.shape
    assert Nx == N, f"x node dim {Nx} != gate dim {N}"
    assert len(lead) >= 1, "x must have at least one leading batch dim"

    M = 1
    for d in lead:
        M *= int(d)

    out_dtype = jnp.result_type(x.dtype, gate.dtype)     # matches torch promotion
    x2 = x.reshape(M, N, C)
    # Gate stays float32 (never quantized to x.dtype) and is pre-broadcast to a
    # lane-dense (N, C) slab so the in-kernel multiply is pure VPU work.
    gate2 = jnp.broadcast_to(gate.astype(jnp.float32)[:, None], (N, C))

    tb, tn, vmem_limit = _pick_tiles(M, N, C, x2.dtype, out_dtype)
    grid = (pl.cdiv(M, tb), pl.cdiv(N, tn))

    out2 = pl.pallas_call(
        _gate_pool_kernel,
        out_shape=jax.ShapeDtypeStruct((M, C), out_dtype),
        grid=grid,
        in_specs=[
            pl.BlockSpec((tn, C), lambda i, k: (k, 0)),        # gate tile (f32)
            pl.BlockSpec((tb, tn, C), lambda i, k: (i, k, 0)), # x tile
        ],
        out_specs=pl.BlockSpec((tb, C), lambda i, k: (i, 0)),
        scratch_shapes=[pltpu.VMEM((tb, C), jnp.float32)],     # f32 accumulator
        compiler_params=pltpu.CompilerParams(
            dimension_semantics=("parallel", "arbitrary"),
            vmem_limit_bytes=vmem_limit,
        ),
    )(gate2, x2)

    return out2.reshape(*lead, C)


def _reference(gate, x):
    if x.ndim == 3:
        return jnp.einsum("bnc,n->bc", x, gate)
    return jnp.einsum("btnc,n->btc", x, gate)


# --------------------------------------------------------------------------- #
# Self-test
# --------------------------------------------------------------------------- #
if __name__ == "__main__":
    key = jax.random.PRNGKey(0)
    k_gate, k_x3, k_x4, k_x5 = jax.random.split(key, 4)

    B, T, N, C = 2, 4, 16, 32

    # Deterministic parameter init matching nn.init.normal_(mean=0.01, std=0.01).
    gate = 0.01 + 0.01 * jax.random.normal(k_gate, (N,), dtype=jnp.float32)

    # 3-D case: (B, N, C) -> (B, C)
    x3 = jax.random.normal(k_x3, (B, N, C), dtype=jnp.float32)
    out3 = jax.block_until_ready(gate_graph_pooling(gate, x3))
    ref3 = _reference(gate, x3)
    assert out3.shape == ref3.shape, (out3.shape, ref3.shape)
    assert jnp.allclose(out3, ref3, atol=1e-5, rtol=1e-5), "3D mismatch vs reference"

    # 4-D case: (B, T, N, C) -> (B, T, C)
    x4 = jax.random.normal(k_x4, (B, T, N, C), dtype=jnp.float32)
    out4 = jax.block_until_ready(gate_graph_pooling(gate, x4))
    ref4 = _reference(gate, x4)
    assert out4.shape == ref4.shape, (out4.shape, ref4.shape)
    assert jnp.allclose(out4, ref4, atol=1e-5, rtol=1e-5), "4D mismatch vs reference"

    # Larger / unaligned case: exercises >=2 parallel batch blocks (M=32) and
    # full-dim blocks that are not (8,128)-multiples (N=24, C=40).
    B2, T2, N2, C2 = 4, 8, 24, 40
    gate_l = 0.01 + 0.01 * jax.random.normal(k_gate, (N2,), dtype=jnp.float32)
    x5 = jax.random.normal(k_x5, (B2, T2, N2, C2), dtype=jnp.float32)
    out5 = jax.block_until_ready(gate_graph_pooling(gate_l, x5))
    ref5 = _reference(gate_l, x5)
    assert out5.shape == ref5.shape, (out5.shape, ref5.shape)
    assert jnp.allclose(out5, ref5, atol=1e-5, rtol=1e-5), "large-case mismatch vs reference"

    print("KERNEL_OK")
</pallas_src>

<mosaic_0001>
module attributes {stable_mosaic.version = 11 : i64} {
  func.func @_gate_pool_kernel(%arg0: i32, %arg1: i32, %arg2: memref<16x32xf32, #tpu.memory_space<vmem>>, %arg3: memref<2x16x32xf32, #tpu.memory_space<vmem>>, %arg4: memref<2x32xf32, #tpu.memory_space<vmem>>, %arg5: memref<2x32xf32, #tpu.memory_space<vmem>>) attributes {dimension_semantics = [#tpu.dimension_semantics<parallel>, #tpu.dimension_semantics<arbitrary>], iteration_bounds = array<i64: 1, 1>, scalar_prefetch = 0 : i64, scratch_operands = 1 : i64, tpu.core_type = #tpu.core_type<tc>, window_params = [{transform_indices = @transform_0, window_bounds = array<i64: 16, 32>}, {transform_indices = @transform_1, window_bounds = array<i64: 2, 16, 32>}, {transform_indices = @transform_2, window_bounds = array<i64: 2, 32>}]} {
    %c0_i32 = arith.constant 0 : i32
    %0 = arith.cmpi eq, %arg1, %c0_i32 : i32
    %1 = arith.extui %0 : i1 to i32
    %c0_i32_0 = arith.constant 0 : i32
    %2 = arith.cmpi ne, %1, %c0_i32_0 : i32
    scf.if %2 {
      %cst_11 = arith.constant 0.000000e+00 : f32
      %15 = vector.broadcast %cst_11 : f32 to vector<2x32xf32>
      %c0_12 = arith.constant 0 : index
      %c0_13 = arith.constant 0 : index
      %16 = vector.load %arg5[%c0_12, %c0_13] : memref<2x32xf32, #tpu.memory_space<vmem>>, vector<2x32xf32>
      tpu.vector_store %arg5[%c0_12, %c0_13], %15 {strides = array<i32>} : memref<2x32xf32, #tpu.memory_space<vmem>>, vector<2x32xf32>,
    } else {
    }
    %c0 = arith.constant 0 : index
    %c0_1 = arith.constant 0 : index
    %c0_2 = arith.constant 0 : index
    %3 = vector.load %arg3[%c0, %c0_1, %c0_2] : memref<2x16x32xf32, #tpu.memory_space<vmem>>, vector<2x16x32xf32>
    %c0_3 = arith.constant 0 : index
    %c0_4 = arith.constant 0 : index
    %4 = vector.load %arg2[%c0_3, %c0_4] : memref<16x32xf32, #tpu.memory_space<vmem>>, vector<16x32xf32>
    %c0_5 = arith.constant 0 : index
    %c0_6 = arith.constant 0 : index
    %5 = vector.load %arg5[%c0_5, %c0_6] : memref<2x32xf32, #tpu.memory_space<vmem>>, vector<2x32xf32>
    %6 = vector.shape_cast %4 : vector<16x32xf32> to vector<1x16x32xf32>
    %7 = vector.broadcast %6 : vector<1x16x32xf32> to vector<2x16x32xf32>
    %8 = arith.mulf %3, %7 : vector<2x16x32xf32>
    %cst = arith.constant dense<0.000000e+00> : vector<2x32xf32>
    %9 = vector.multi_reduction <add>, %8, %cst [1] : vector<2x16x32xf32> to vector<2x32xf32>
    %10 = arith.addf %5, %9 : vector<2x32xf32>
    %c0_7 = arith.constant 0 : index
    %c0_8 = arith.constant 0 : index
    %11 = vector.load %arg5[%c0_7, %c0_8] : memref<2x32xf32, #tpu.memory_space<vmem>>, vector<2x32xf32>
    tpu.vector_store %arg5[%c0_7, %c0_8], %10 {strides = array<i32>} : memref<2x32xf32, #tpu.memory_space<vmem>>, vector<2x32xf32>,
    %c0_i32_9 = arith.constant 0 : i32
    %12 = arith.cmpi eq, %arg1, %c0_i32_9 : i32
    %13 = arith.extui %12 : i1 to i32
    %c0_i32_10 = arith.constant 0 : i32
    %14 = arith.cmpi ne, %13, %c0_i32_10 : i32
    scf.if %14 {
      %c0_11 = arith.constant 0 : index
      %c0_12 = arith.constant 0 : index
      %15 = vector.load %arg5[%c0_11, %c0_12] : memref<2x32xf32, #tpu.memory_space<vmem>>, vector<2x32xf32>
      %c0_13 = arith.constant 0 : index
      %c0_14 = arith.constant 0 : index
      %16 = vector.load %arg4[%c0_13, %c0_14] : memref<2x32xf32, #tpu.memory_space<vmem>>, vector<2x32xf32>
      tpu.vector_store %arg4[%c0_13, %c0_14], %15 {strides = array<i32>} : memref<2x32xf32, #tpu.memory_space<vmem>>, vector<2x32xf32>,
    } else {
    }
    return
  }
  func.func @transform_0(%arg0: i32, %arg1: i32) -> (i32, i32) {
    %c0_i32 = arith.constant 0 : i32
    %c0_i32_0 = arith.constant 0 : i32
    return %arg1, %c0_i32 : i32, i32
  }
  func.func @transform_1(%arg0: i32, %arg1: i32) -> (i32, i32, i32) {
    %c0_i32 = arith.constant 0 : i32
    %c0_i32_0 = arith.constant 0 : i32
    return %arg0, %arg1, %c0_i32 : i32, i32, i32
  }
  func.func @transform_2(%arg0: i32, %arg1: i32) -> (i32, i32) {
    %c0_i32 = arith.constant 0 : i32
    %c0_i32_0 = arith.constant 0 : i32
    return %arg0, %c0_i32 : i32, i32
  }
}

</mosaic_0001>

<bundles_post_ra>
// kernel: tpu_custom_call.1
= control target key start
LH: loop header
LB: loop body
LE: loop exit
PB: predicated region body
PF: predicated region fallthrough
CT: control target
= control target key end

     0   :  { %7 = vsyncpa [#allocation4], 0  ;;  %s243_s0 = inlined_call_operand.hbm [shape: f32[16,32], index: 0, kind: input, shape index: {}]   ;;  %s244_s1 = inlined_call_operand.hbm [shape: f32[2,16,32], index: 1, kind: input, shape index: {}]   ;;  %s245_s2 = inlined_call_operand.hbm [shape: f32[2,32], index: 2, kind: output, shape index: {}]  }
   0x1   :  { %8 = vsyncpa [#allocation7], 0 }
   0x2   :  { %9 = vsyncpa [#allocation5], 0  ;;  %s183_s9 = smov [#allocation3]   ;;  %s111_s13 = scalar_lea.hbm %s243_s0, 256 }
   0x3   :  { %s15_s10 = sshll.u32 %s183_s9, 4  ;;  %p112_p0 = scmp.ne.s32.totalorder %s243_s0, %s111_s13  ;;  %s16_s10 = int_to_ptr.vmem [resolvable:$true] %s15_s10 }
   0x4   :  { %p115_p1 = scmp.lt.u32.totalorder %s111_s13, %s243_s0 }
   0x6   :  { %p117_p2 = pnand %p115_p1, %p112_p0 }
   0x8   :  { %120 = shalt.err (!%p117_p2)
}
   0x9   :  { %s121_s18 = scalar_lea.vmem %s16_s10, 256  ;;  %p126_p4 = scmp.lt.s32.totalorder %s16_s10, %s16_s10 }
   0xa   :  { %p122_p3 = scmp.ne.s32.totalorder %s16_s10, %s121_s18  ;;  %p127_p5 = scmp.lt.s32.totalorder %s121_s18, %s121_s18 }
   0xc   :  { %p128_p6 = por %p127_p5, %p126_p4 }
   0xe   :  { %p129_p7 = pnand %p128_p6, %p122_p3 }
  0x10   :  { %132 = shalt.err (!%p129_p7)
}
  0x11   :  { %s184_s19 = smov 128   ;;  %s185_s20 = smov 8  }
  0x12   :  { %21 = dma.hbm_to_vmem [thread:$0]  %s243_s0, 256, %s16_s10, [#allocation4], %s184_s19, %s184_s19, %s185_s20  }
  0x13   :  { %s186_s23 = smov [#allocation6]   ;;  %s133_s27 = scalar_lea.hbm %s244_s1, 512 }
  0x14   :  { %s27_s24 = sshll.u32 %s186_s23, 4  ;;  %p134_p8 = scmp.ne.s32.totalorder %s244_s1, %s133_s27  ;;  %s28_s24 = int_to_ptr.vmem [resolvable:$true] %s27_s24 }
  0x15   :  { %p137_p9 = scmp.lt.u32.totalorder %s133_s27, %s244_s1 }
  0x17   :  { %p139_p10 = pnand %p137_p9, %p134_p8 }
  0x19   :  { %142 = shalt.err (!%p139_p10)
}
  0x1a   :  { %s143_s4 = scalar_lea.vmem %s28_s24, 512  ;;  %p148_p12 = scmp.lt.s32.totalorder %s28_s24, %s28_s24 }
  0x1b   :  { %p144_p11 = scmp.ne.s32.totalorder %s28_s24, %s143_s4  ;;  %p149_p13 = scmp.lt.s32.totalorder %s143_s4, %s143_s4 }
  0x1d   :  { %p150_p0 = por %p149_p13, %p148_p12 }
  0x1f   :  { %p151_p1 = pnand %p150_p0, %p144_p11 }
  0x21   :  { %154 = shalt.err (!%p151_p1)
}
  0x22   :  { %33 = dma.hbm_to_vmem [thread:$0]  %s244_s1, 512, %s28_s24, [#allocation7], %s184_s19, %s184_s19, %s185_s20  }
  0x23   :  { %177 = dma.done.wait [#allocation4], 256  }
  0x24   :  { %178 = vsyncadd [#allocation4], 4294967040 }
  0x25   :  { %179 = dma.done.wait [#allocation7], 512  }
  0x26   :  { %180 = vsyncadd [#allocation7], 4294966784  ;;  %vm44_vm0 = vcmask 254976   ;;  %v187_v0 = vmov 0.0   ;;  %v46_v1 = vld [vmem:[#allocation6] sm:$0xff]  ;;  %v47_v2 = vld [vmem:[#allocation6 + $0x8] sm:$0xff] }
  0x27   :  { %45 = vst.msk [vmem:[#allocation2] sm:$0x3] %vm44_vm0, %v187_v0  ;;  %v48_v3 = vld [vmem:[#allocation6 + $0x10] sm:$0xff]  ;;  %v49_v4 = vld [vmem:[#allocation6 + $0x18] sm:$0xff]  ;;  %vm57_vm1 = vcmask 261120   ;;  %vm78_vm2 = vcmask 1041409  }
  0x28   :  { %v50_v5 = vld [vmem:[#allocation3] sm:$0xff]  ;;  %v51_v6 = vld [vmem:[#allocation3 + $0x8] sm:$0xff]  ;;  %s188_s1 = smov [#allocation8]  }
  0x29   :  { %v53_v7 = vmul.f32 %v50_v5, %v46_v1  ;;  %v54_v8 = vmul.f32 %v51_v6, %v47_v2  ;;  %v55_v9 = vmul.f32 %v50_v5, %v48_v3  ;;  %v56_v10 = vmul.f32 %v51_v6, %v49_v4  ;;  %s95_s6 = sshll.u32 %s188_s1, 4  ;;  %s96_s6 = int_to_ptr.vmem [resolvable:$true] %s95_s6 }
  0x2a   :  { %s155_s7 = scalar_lea.vmem %s96_s6, 32  ;;  %p160_p3 = scmp.lt.s32.totalorder %s96_s6, %s96_s6 }
  0x2b   :  { %v58_v11 = vsel %vm57_vm1, %v53_v7, 0.0  ;;  %v59_v12 = vsel %vm57_vm1, %v54_v8, 0.0  ;;  %v67_v13 = vsel %vm57_vm1, %v55_v9, 0.0  ;;  %v68_v14 = vsel %vm57_vm1, %v56_v10, 0.0  ;;  %p156_p2 = scmp.ne.s32.totalorder %s96_s6, %s155_s7  ;;  %p161_p4 = scmp.lt.s32.totalorder %s155_s7, %s155_s7 }
  0x2c   :  { %v60_v15 = vadd.f32 %v59_v12, %v58_v11  ;;  %v69_v16 = vadd.f32 %v68_v14, %v67_v13 }
  0x2d   :  { %p162_p5 = por %p161_p4, %p160_p3 }
  0x2e   :  { %v61_v17 = vrot.slane %v60_v15, 4  ;;  %v70_v18 = vrot.slane %v69_v16, 4  ;;  %v52_v27 = vld [vmem:[#allocation2] sm:$0x3] }
  0x2f   :  { %p163_p6 = pnand %p162_p5, %p156_p2 }
  0x30   :  { %v62_v19 = vadd.f32 %v61_v17, %v60_v15  ;;  %v71_v20 = vadd.f32 %v70_v18, %v69_v16 }
  0x32   :  { %v63_v21 = vrot.slane %v62_v19, 2  ;;  %v72_v22 = vrot.slane %v71_v20, 2 }
  0x34   :  { %v64_v23 = vadd.f32 %v63_v21, %v62_v19  ;;  %v73_v24 = vadd.f32 %v72_v22, %v71_v20 }
  0x36   :  { %v65_v25 = vrot.slane %v64_v23, 1  ;;  %v74_v26 = vrot.slane %v73_v24, 1 }
  0x38   :  { %v66_v28 = vadd.f32 %v65_v25, %v64_v23  ;;  %v75_v29 = vadd.f32 %v74_v26, %v73_v24 }
  0x3a   :  { %v79_v30 = vsel %vm78_vm2, %v75_v29, %v66_v28 }
  0x3b   :  { %v81_v31 = vadd.f32 %v79_v30, %v52_v27 }
  0x3d   :  { %83 = vst.msk [vmem:[#allocation2] sm:$0x3] %vm44_vm0, %v81_v31 }
  0x44   :  { %v87_v32 = vld [vmem:[#allocation2] sm:$0x3] }
  0x45   :  { %88 = vst.msk [vmem:[#allocation8] sm:$0x3] %vm44_vm0, %v87_v32 }
  0x46   :  { %166 = shalt.err (!%p163_p6)
}
  0x47   :  { %s167_s10 = scalar_lea.hbm %s245_s2, 32 }
  0x48   :  { %p168_p7 = scmp.ne.s32.totalorder %s245_s2, %s167_s10  ;;  %p171_p8 = scmp.lt.u32.totalorder %s167_s10, %s245_s2 }
  0x4a   :  { %p173_p9 = pnand %p171_p8, %p168_p7 }
  0x4c   :  { %176 = shalt.err (!%p173_p9)
}
  0x4d   :  { %98 = dma.vmem_to_hbm [thread:$0]  %s96_s6, 32, %s245_s2, [#allocation5]  }
  0x4e   :  { %181 = dma.done.wait [#allocation5], 32  }
  0x4f   :  { %182 = vsyncadd [#allocation5], 4294967264 }
  0x50   :  { %102 = vsyncpa [#allocation4], 1 }
  0x51   :  { %103 = vsyncpa [#allocation7], 1 }
  0x52   :  { %104 = vsyncpa [#allocation5], 1 }

</bundles_post_ra>
